<compile_context>
chip_gen: v5e
topology: v5e:2x2
jax: 0.10.0
libtpu: 0.0.40
codegen_flags: <defaults>
</compile_context>

<pallas_src>
import jax
import jax.numpy as jnp
from jax import lax
from jax.experimental import pallas as pl
from jax.experimental.pallas import tpu as pltpu


def _round_up(n, m):
    return ((n + m - 1) // m) * m


def _logreg_kernel(x_ref, w_ref, b_ref, o_ref):
    """One batch tile of logits = x @ w + b.

    x_ref: (TILE_B, D) VMEM  -- streamed per grid step (double-buffered)
    w_ref: (D, 1)      VMEM  -- resident across all grid steps (DMA'd once)
    b_ref: (1, 1)      SMEM  -- scalar bias
    o_ref: (TILE_B, 1) VMEM  -- output column
    """
    # LHS contracts on its last (lane) dim, RHS contracts on its first
    # (sublane) dim -> MXU-native layout for both operands, no x relayout.
    logits = lax.dot_general(
        x_ref[...], w_ref[...],
        dimension_numbers=(((1,), (0,)), ((), ())),
        preferred_element_type=jnp.float32,
    )
    o_ref[...] = (logits + b_ref[0, 0]).astype(o_ref.dtype)


def logistic_regression_forward(x, weight, bias, *, tile_b=None):
    """x: (B, D) f32, weight: (1, D) f32, bias: (1,) f32 -> (B,) f32 logits."""
    B, D = x.shape
    x = x.astype(jnp.float32)
    w_col = weight.astype(jnp.float32).reshape(D, 1)   # (1, D) -> (D, 1) column
    b_smem = bias.astype(jnp.float32).reshape(1, 1)

    # --- generation-aware VMEM budget -------------------------------------
    try:
        vmem_cap = int(pltpu.get_tpu_info().vmem_capacity_bytes)
    except Exception:                     # conservative fallback (fits v7x)
        vmem_cap = 64 * 1024 * 1024
    # Pipeline budget: <= ~48 MiB on v7x (64 MiB physical), <= 64 MiB on v5e/v6e.
    vmem_limit = min((vmem_cap * 3) // 4, 64 * 1024 * 1024)

    # --- tile sizing in bytes (lane-padded) --------------------------------
    d_lanes = _round_up(D, 128)                 # x last dim pads to 128 lanes
    w_bytes = _round_up(D, 8) * 128 * 4         # (D, 1) column, lane-padded
    # Per batch row, per grid step: double-buffered x block + double-buffered
    # (tb, 1) output block (which also pads its last dim to 128 lanes).
    per_row_bytes = 2 * (d_lanes + 128) * 4

    # Make sure the limit at least covers the minimum (tb=128) footprint.
    vmem_limit = max(vmem_limit, w_bytes + per_row_bytes * 128 + (2 << 20))

    budget = max(vmem_limit - w_bytes - (2 << 20), per_row_bytes * 128)
    tb_budget = max(128, (budget // per_row_bytes) // 128 * 128)

    # Keep >= ~4 grid steps so v7x's two TensorCores both get work.
    tb_steps = max(128, _round_up(pl.cdiv(B, 4), 128))
    tb = min(tb_budget, tb_steps)
    if tile_b is not None:                       # optional override / ceiling
        tb = min(tb, max(128, (tile_b // 128) * 128))

    grid = (pl.cdiv(B, tb),)                     # ragged last block: no jnp.pad

    out = pl.pallas_call(
        _logreg_kernel,
        out_shape=jax.ShapeDtypeStruct((B, 1), jnp.float32),
        grid=grid,
        in_specs=[
            pl.BlockSpec((tb, D), lambda i: (i, 0)),   # x: streamed batch tiles
            pl.BlockSpec((D, 1), lambda i: (0, 0)),    # weight column: resident
            pl.BlockSpec(memory_space=pltpu.SMEM),     # bias scalar in SMEM
        ],
        out_specs=pl.BlockSpec((tb, 1), lambda i: (i, 0)),
        compiler_params=pltpu.CompilerParams(
            dimension_semantics=("parallel",),   # shard batch tiles across TCs
            vmem_limit_bytes=int(vmem_limit),
        ),
        cost_estimate=pl.CostEstimate(
            flops=2 * B * D,
            transcendentals=0,
            bytes_accessed=(B * D + D + B + 1) * 4,
        ),
    )(x, w_col, b_smem)

    logits = out[:, 0]                           # (B,)
    # torch's .squeeze() also drops the batch dim when B == 1
    return logits[0] if B == 1 else logits


if __name__ == "__main__":
    key = jax.random.PRNGKey(0)
    kx, kw, kb, kx2, kx3 = jax.random.split(key, 5)

    batch, input_dim = 8, 32                     # small shapes for the module

    x = jax.random.normal(kx, (batch, input_dim), dtype=jnp.float32)

    # Deterministic nn.Linear-style init: U(-1/sqrt(D), 1/sqrt(D))
    bound = 1.0 / jnp.sqrt(jnp.float32(input_dim))
    weight = jax.random.uniform(kw, (1, input_dim), jnp.float32, -bound, bound)
    bias = jax.random.uniform(kb, (1,), jnp.float32, -bound, bound)

    y = jax.block_until_ready(logistic_regression_forward(x, weight, bias))
    y_ref = jnp.squeeze(x @ weight.T + bias, axis=-1)
    assert y.shape == (batch,)
    assert jnp.allclose(y, y_ref, atol=1e-5, rtol=1e-5)

    # Non-multiple batch with a forced small tile: exercises the multi-step
    # grid + ragged (un-padded) last block path.
    batch2 = 300
    x2 = jax.random.normal(kx2, (batch2, input_dim), dtype=jnp.float32)
    y2 = jax.block_until_ready(
        logistic_regression_forward(x2, weight, bias, tile_b=128))
    y2_ref = jnp.squeeze(x2 @ weight.T + bias, axis=-1)
    assert y2.shape == (batch2,)
    assert jnp.allclose(y2, y2_ref, atol=1e-5, rtol=1e-5)

    # B == 1: torch .squeeze() drops both dims -> scalar.
    x3 = jax.random.normal(kx3, (1, input_dim), dtype=jnp.float32)
    y3 = jax.block_until_ready(logistic_regression_forward(x3, weight, bias))
    y3_ref = jnp.squeeze(x3 @ weight.T + bias)
    assert y3.shape == ()
    assert jnp.allclose(y3, y3_ref, atol=1e-5, rtol=1e-5)

    print("KERNEL_OK")
</pallas_src>

<mosaic_0001>
module attributes {stable_mosaic.version = 11 : i64} {
  func.func @_logreg_kernel(%arg0: i32, %arg1: memref<128x32xf32, #tpu.memory_space<vmem>>, %arg2: memref<32x1xf32, #tpu.memory_space<vmem>>, %arg3: memref<1x1xf32, #tpu.memory_space<smem>>, %arg4: memref<128x1xf32, #tpu.memory_space<vmem>>) attributes {dimension_semantics = [#tpu.dimension_semantics<parallel>], iteration_bounds = array<i64: 1>, scalar_prefetch = 0 : i64, scratch_operands = 0 : i64, tpu.core_type = #tpu.core_type<tc>, window_params = [{transform_indices = @transform_0, window_bounds = array<i64: 128, 32>}, {pipeline_mode = #tpu.pipeline_mode<synchronous>, transform_indices = @transform_1, window_bounds = array<i64: 32, 1>}, {transform_indices = @transform_2, window_bounds = array<i64: 1, 1>}, {transform_indices = @transform_3, window_bounds = array<i64: 128, 1>}]} {
    %c0 = arith.constant 0 : index
    %c0_0 = arith.constant 0 : index
    %0 = vector.load %arg1[%c0, %c0_0] : memref<128x32xf32, #tpu.memory_space<vmem>>, vector<128x32xf32>
    %c0_1 = arith.constant 0 : index
    %c0_2 = arith.constant 0 : index
    %1 = vector.load %arg2[%c0_1, %c0_2] : memref<32x1xf32, #tpu.memory_space<vmem>>, vector<32x1xf32>
    %cst = arith.constant dense<0.000000e+00> : vector<128x1xf32>
    %2 = tpu.matmul %0, %1, %cst {dimension_numbers = #tpu.dot_dimension_numbers<[1], [0], [0], [1], [0, 0, 1, 1], [], []>} : vector<128x32xf32>, vector<32x1xf32>, vector<128x1xf32> -> vector<128x1xf32>
    %c0_3 = arith.constant 0 : index
    %c0_4 = arith.constant 0 : index
    %3 = memref.load %arg3[%c0_3, %c0_4] : memref<1x1xf32, #tpu.memory_space<smem>>
    %4 = vector.broadcast %3 : f32 to vector<128x1xf32>
    %5 = arith.addf %2, %4 : vector<128x1xf32>
    %c0_5 = arith.constant 0 : index
    %c0_6 = arith.constant 0 : index
    %6 = vector.load %arg4[%c0_5, %c0_6] : memref<128x1xf32, #tpu.memory_space<vmem>>, vector<128x1xf32>
    tpu.vector_store %arg4[%c0_5, %c0_6], %5 {strides = array<i32>} : memref<128x1xf32, #tpu.memory_space<vmem>>, vector<128x1xf32>,
    return
  }
  func.func @transform_0(%arg0: i32) -> (i32, i32) {
    %c0_i32 = arith.constant 0 : i32
    %c0_i32_0 = arith.constant 0 : i32
    return %arg0, %c0_i32 : i32, i32
  }
  func.func @transform_1(%arg0: i32) -> (i32, i32) {
    %c0_i32 = arith.constant 0 : i32
    %c0_i32_0 = arith.constant 0 : i32
    %c0_i32_1 = arith.constant 0 : i32
    return %c0_i32, %c0_i32_0 : i32, i32
  }
  func.func @transform_2(%arg0: i32) -> (i32, i32) {
    %c0_i32 = arith.constant 0 : i32
    %c0_i32_0 = arith.constant 0 : i32
    %c0_i32_1 = arith.constant 0 : i32
    return %c0_i32, %c0_i32_0 : i32, i32
  }
  func.func @transform_3(%arg0: i32) -> (i32, i32) {
    %c0_i32 = arith.constant 0 : i32
    %c0_i32_0 = arith.constant 0 : i32
    return %arg0, %c0_i32 : i32, i32
  }
}

</mosaic_0001>

<bundles_post_ra>
// kernel: tpu_custom_call.1
= control target key start
LH: loop header
LB: loop body
LE: loop exit
PB: predicated region body
PF: predicated region fallthrough
CT: control target
= control target key end

     0   :  { %vm37_vm0 = vcmask 261120   ;;  %vm151_vm1 = vcmask 7168   ;;  %s339_s0 = inlined_call_operand.vmem [shape: f32[8,32], index: 0, kind: input, shape index: {}]   ;;  %s340_s1 = inlined_call_operand.vmem [shape: f32[32,1], index: 1, kind: input, shape index: {}]   ;;  %s341_s2 = inlined_call_operand.<no memory space> [shape: f32[1,1], index: 2, kind: input, shape index: {}]   ;;  %s342_s3 = inlined_call_operand.vmem [shape: f32[8,1], index: 3, kind: output, shape index: {}]  }
   0x1   :  { %v34_v0 = vld [vmem:[%s340_s1 + $0x18] sm:$0xff]  ;;  %v33_v1 = vld [vmem:[%s340_s1 + $0x10] sm:$0xff]  ;;  %v32_v2 = vld [vmem:[%s340_s1 + $0x8] sm:$0xff]  ;;  %v36_v20 = vstv %s341_s2 }
   0x2   :  { %226 = vmatpush.msra.mxu2 %v34_v0  ;;  %227 = vmatpush.msra.mxu3 %v34_v0  ;;  %v31_v3 = vld [vmem:[%s340_s1] sm:$0xff]  ;;  %v24_v8 = vld [vmem:[%s339_s0 + $0x48] sm:$0xff]  ;;  %v25_v12 = vld [vmem:[%s339_s0 + $0x50] sm:$0xff] }
   0x3   :  { %98 = vmatpush.msra.mxu0 %v34_v0  ;;  %225 = vmatpush.msra.mxu1 %v34_v0  ;;  %v23_v4 = vld [vmem:[%s339_s0 + $0x40] sm:$0xff]  ;;  %v28_v9 = vld [vmem:[%s339_s0 + $0x68] sm:$0xff]  ;;  %v29_v13 = vld [vmem:[%s339_s0 + $0x70] sm:$0xff] }
   0x4   :  { %229 = vmatpush.msra.mxu2 %v33_v1  ;;  %230 = vmatpush.msra.mxu3 %v33_v1  ;;  %v27_v5 = vld [vmem:[%s339_s0 + $0x60] sm:$0xff]  ;;  %v16_v10 = vld [vmem:[%s339_s0 + $0x8] sm:$0xff]  ;;  %v17_v14 = vld [vmem:[%s339_s0 + $0x10] sm:$0xff] }
   0x5   :  { %99 = vmatpush.msra.mxu0 %v33_v1  ;;  %228 = vmatpush.msra.mxu1 %v33_v1  ;;  %v15_v6 = vld [vmem:[%s339_s0] sm:$0xff]  ;;  %v20_v11 = vld [vmem:[%s339_s0 + $0x28] sm:$0xff]  ;;  %v21_v15 = vld [vmem:[%s339_s0 + $0x30] sm:$0xff] }
   0x6   :  { %232 = vmatpush.msra.mxu2 %v32_v2  ;;  %233 = vmatpush.msra.mxu3 %v32_v2  ;;  %v19_v7 = vld [vmem:[%s339_s0 + $0x20] sm:$0xff]  ;;  %v26_v16 = vld [vmem:[%s339_s0 + $0x58] sm:$0xff] }
   0x7   :  { %100 = vmatpush.msra.mxu0 %v32_v2  ;;  %231 = vmatpush.msra.mxu1 %v32_v2  ;;  %v30_v17 = vld [vmem:[%s339_s0 + $0x78] sm:$0xff] }
   0x8   :  { %235 = vmatpush.msra.mxu2 %v31_v3  ;;  %236 = vmatpush.msra.mxu3 %v31_v3  ;;  %v18_v18 = vld [vmem:[%s339_s0 + $0x18] sm:$0xff] }
   0x9   :  { %217 = vmatmul.msk.f32.vlgmr.msra.gmra.mxu2 %vm37_vm0, %v23_v4  ;;  %221 = vmatmul.msk.f32.vlgmr.msra.gmra.mxu3 %vm37_vm0, %v27_v5  ;;  %v22_v19 = vld [vmem:[%s339_s0 + $0x38] sm:$0xff] }
   0xa   :  { %101 = vmatpush.msra.mxu0 %v31_v3  ;;  %234 = vmatpush.msra.mxu1 %v31_v3 }
   0xb   :  { %209 = vmatmul.msk.f32.vlgmr.msra.gmra.mxu0 %vm37_vm0, %v15_v6  ;;  %213 = vmatmul.msk.f32.vlgmr.msra.gmra.mxu1 %vm37_vm0, %v19_v7 }
  0x11   :  { %218 = vmatmul.msk.f32.gmra.mxu2 %vm37_vm0, %v24_v8  ;;  %222 = vmatmul.msk.f32.gmra.mxu3 %vm37_vm0, %v28_v9 }
  0x13   :  { %210 = vmatmul.msk.f32.gmra.mxu0 %vm37_vm0, %v16_v10  ;;  %214 = vmatmul.msk.f32.gmra.mxu1 %vm37_vm0, %v20_v11 }
  0x19   :  { %219 = vmatmul.msk.f32.gmra.mxu2 %vm37_vm0, %v25_v12  ;;  %223 = vmatmul.msk.f32.gmra.mxu3 %vm37_vm0, %v29_v13 }
  0x1b   :  { %211 = vmatmul.msk.f32.gmra.mxu0 %vm37_vm0, %v17_v14  ;;  %215 = vmatmul.msk.f32.gmra.mxu1 %vm37_vm0, %v21_v15 }
  0x21   :  { %220 = vmatmul.msk.f32.gmra.mxu2 %vm37_vm0, %v26_v16  ;;  %224 = vmatmul.msk.f32.gmra.mxu3 %vm37_vm0, %v30_v17 }
  0x23   :  { %212 = vmatmul.msk.f32.gmra.mxu0 %vm37_vm0, %v18_v18  ;;  %216 = vmatmul.msk.f32.gmra.mxu1 %vm37_vm0, %v22_v19 }
  0x88   :  { %v103_v21 = vpop.f32.mrf.mxu0  ;;  %v115_v22 = vpop.f32.mrf.mxu1 }
  0x89   :  { %v104_v23 = vadd.f32 %v103_v21, %v36_v20 }
  0x8b   :  { %152 = vst.msk [vmem:[#allocation3] sm:$0xff] %vm151_vm1, %v104_v23 }
  0x8c   :  { %v127_v24 = vpop.f32.mrf.mxu2  ;;  %v139_v25 = vpop.f32.mrf.mxu3 }
  0x90   :  { %v106_v26 = vpop.f32.mrf.mxu0  ;;  %v118_v27 = vpop.f32.mrf.mxu1 }
  0x92   :  { %v198_v28 = vld [vmem:[#allocation3] sm:$0xff] }
  0x93   :  { %199 = vst [vmem:[%s342_s3] sm:$0xff] %v198_v28 }
  0x94   :  { %v130_v29 = vpop.f32.mrf.mxu2  ;;  %v142_v30 = vpop.f32.mrf.mxu3 }
  0x98   :  { %v109_v31 = vpop.f32.mrf.mxu0  ;;  %v121_v32 = vpop.f32.mrf.mxu1 }
  0x9c   :  { %v133_v33 = vpop.f32.mrf.mxu2  ;;  %v145_v34 = vpop.f32.mrf.mxu3 }
  0xa0   :  { %v112_v35 = vpop.f32.mrf.mxu0  ;;  %v124_v36 = vpop.f32.mrf.mxu1 }
  0xa4   :  { %v136_v37 = vpop.f32.mrf.mxu2  ;;  %v148_v38 = vpop.f32.mrf.mxu3 }

</bundles_post_ra>
